<compile_context>
chip_gen: v7x
topology: tpu7x:2x2x1
jax: 0.10.0
libtpu: 0.0.40
codegen_flags: <defaults>
</compile_context>

<pallas_src>
import functools

import jax
import jax.numpy as jnp
from jax.experimental import pallas as pl
from jax.experimental.pallas import tpu as pltpu


# ---------------------------------------------------------------------------
# helpers
# ---------------------------------------------------------------------------
def _round_up(x, m):
    return ((x + m - 1) // m) * m


def _largest_divisor_tile(n_pad, candidates):
    for t in candidates:
        if t <= n_pad and n_pad % t == 0:
            return t
    # n_pad is always a multiple of 128, so this is the guaranteed fallback.
    return 128


def _agg_tiles(n_pad):
    """Decoupled (tm, tk) for the aggregation.

    Bigger tm amortizes per-grid-step overhead (and Z re-reads in the streamed-Z
    fallback); tk stays <= 512 so A tiles remain a couple of MiB double-buffered.
    """
    tm = _largest_divisor_tile(n_pad, (1024, 512, 256, 128))
    tk = _largest_divisor_tile(n_pad, (512, 256, 128))
    # Keep >= 2 row tiles when possible so the "parallel" axis can split across
    # v7x's two TensorCores (no-op on single-TC v5e/v6e).
    while tm > 256 and n_pad // tm < 2:
        tm //= 2
    return tm, tk


def _z_resident_ok(n_pad, c_pad, itemsize=2):
    # Constant-index BlockSpec keeps Z in VMEM for the whole kernel.  Assume the
    # pipeliner still double-buffers it and leave headroom for A tiles / acc / out
    # under v5e's 16 MiB default scoped VMEM (v6e/v7x have 32 MiB scoped).
    return 2 * n_pad * c_pad * itemsize <= 8 * 1024 * 1024


def _pad2d(x, rows, cols):
    r, c = x.shape
    return jnp.pad(x, ((0, rows - r), (0, cols - c)))


# ---------------------------------------------------------------------------
# kernels
# ---------------------------------------------------------------------------
def _project_kernel(x_ref, w_ref, o_ref):
    """Z = X @ W, row-tiled. bf16 inputs, f32 accumulation on the MXU."""
    o_ref[...] = jnp.dot(
        x_ref[...], w_ref[...], preferred_element_type=jnp.float32
    ).astype(o_ref.dtype)


def _z_tile(z_ref, k, *, z_resident, tk):
    """Current contraction tile of Z: sliced out of the VMEM-resident full Z, or the
    streamed per-k tile delivered by the BlockSpec."""
    if z_resident:
        start = pl.multiple_of(k * tk, tk)
        return z_ref[pl.ds(start, tk), :]
    return z_ref[...]


def _agg_fused_kernel(a_ref, z_ref, b1_ref, w2_ref, o_ref, acc_ref, *, z_resident, tk):
    """Layer 1 + fused layer-2 projection:
         acc = b1 + sum_k A[i,k] @ Z1[k]        (f32 accumulator, resident across k)
         out = relu(acc) @ W2                   (written once at k == last)
    """
    k = pl.program_id(1)

    @pl.when(k == 0)
    def _():
        # bias folded into the accumulator init (saves a VPU pass in the epilogue)
        acc_ref[...] = jnp.broadcast_to(b1_ref[...], acc_ref.shape)

    acc_ref[...] += jnp.dot(
        a_ref[...],
        _z_tile(z_ref, k, z_resident=z_resident, tk=tk),
        preferred_element_type=jnp.float32,
    )

    @pl.when(k == pl.num_programs(1) - 1)
    def _():
        h = jnp.maximum(acc_ref[...], 0.0).astype(w2_ref.dtype)
        o_ref[...] = jnp.dot(
            h, w2_ref[...], preferred_element_type=jnp.float32
        ).astype(o_ref.dtype)


def _agg_kernel(a_ref, z_ref, b_ref, o_ref, acc_ref, *, z_resident, tk):
    """Layer 2 aggregation:  out = b + sum_k A[i,k] @ Z2[k]."""
    k = pl.program_id(1)

    @pl.when(k == 0)
    def _():
        acc_ref[...] = jnp.broadcast_to(b_ref[...], acc_ref.shape)

    acc_ref[...] += jnp.dot(
        a_ref[...],
        _z_tile(z_ref, k, z_resident=z_resident, tk=tk),
        preferred_element_type=jnp.float32,
    )

    @pl.when(k == pl.num_programs(1) - 1)
    def _():
        o_ref[...] = acc_ref[...].astype(o_ref.dtype)


# ---------------------------------------------------------------------------
# pallas_call wrappers
# ---------------------------------------------------------------------------
def _project(x_pad, w_pad, *, out_dtype, tm):
    n_pad, cin_pad = x_pad.shape
    cout_pad = w_pad.shape[1]
    flops = 2 * n_pad * cin_pad * cout_pad
    bytes_accessed = int(
        x_pad.size * x_pad.dtype.itemsize
        + w_pad.size * w_pad.dtype.itemsize
        + n_pad * cout_pad * jnp.dtype(out_dtype).itemsize
    )
    return pl.pallas_call(
        _project_kernel,
        out_shape=jax.ShapeDtypeStruct((n_pad, cout_pad), out_dtype),
        grid_spec=pltpu.PrefetchScalarGridSpec(
            num_scalar_prefetch=0,
            grid=(n_pad // tm,),
            in_specs=[
                pl.BlockSpec((tm, cin_pad), lambda i: (i, 0)),
                pl.BlockSpec((cin_pad, cout_pad), lambda i: (0, 0)),
            ],
            out_specs=pl.BlockSpec((tm, cout_pad), lambda i: (i, 0)),
        ),
        compiler_params=pltpu.CompilerParams(dimension_semantics=("parallel",)),
        cost_estimate=pl.CostEstimate(
            flops=int(flops), transcendentals=0, bytes_accessed=bytes_accessed
        ),
    )(x_pad, w_pad)


def _gcn_aggregate(a_pad, z_pad, b_pad, w2_pad, *, out_dtype, tm, tk, z_resident):
    """Y = A @ Z + b, optionally fused with `relu(.) @ W2` when w2_pad is given."""
    n_pad = a_pad.shape[0]
    c_z = z_pad.shape[1]                       # channel width of Z (== bias width)
    c_out = w2_pad.shape[1] if w2_pad is not None else c_z
    grid = (n_pad // tm, n_pad // tk)

    if z_resident:
        # Constant block index => DMA'd once, stays resident in VMEM; kernel slices by k.
        z_spec = pl.BlockSpec((n_pad, c_z), lambda i, k: (0, 0))
    else:
        z_spec = pl.BlockSpec((tk, c_z), lambda i, k: (k, 0))

    in_specs = [
        pl.BlockSpec((tm, tk), lambda i, k: (i, k)),     # A tile (dominant HBM stream)
        z_spec,                                          # Z (resident or k-streamed)
        pl.BlockSpec((1, c_z), lambda i, k: (0, 0)),     # bias
    ]

    if w2_pad is not None:
        in_specs.append(pl.BlockSpec(w2_pad.shape, lambda i, k: (0, 0)))  # W2 resident
        kernel = functools.partial(_agg_fused_kernel, z_resident=z_resident, tk=tk)
        args = (a_pad, z_pad, b_pad, w2_pad)
        flops = 2 * n_pad * n_pad * c_z + 2 * n_pad * c_z * c_out
        w2_bytes = w2_pad.size * w2_pad.dtype.itemsize
    else:
        kernel = functools.partial(_agg_kernel, z_resident=z_resident, tk=tk)
        args = (a_pad, z_pad, b_pad)
        flops = 2 * n_pad * n_pad * c_z
        w2_bytes = 0

    z_reads = 1 if z_resident else grid[0]
    bytes_accessed = int(
        a_pad.size * a_pad.dtype.itemsize                 # A read exactly once
        + z_reads * z_pad.size * z_pad.dtype.itemsize     # Z once (resident) or per row tile
        + w2_bytes
        + n_pad * c_out * jnp.dtype(out_dtype).itemsize   # output written once
    )

    return pl.pallas_call(
        kernel,
        out_shape=jax.ShapeDtypeStruct((n_pad, c_out), out_dtype),
        grid_spec=pltpu.PrefetchScalarGridSpec(
            num_scalar_prefetch=0,
            grid=grid,
            in_specs=in_specs,
            out_specs=pl.BlockSpec((tm, c_out), lambda i, k: (i, 0)),
            scratch_shapes=[pltpu.VMEM((tm, c_z), jnp.float32)],
        ),
        compiler_params=pltpu.CompilerParams(
            dimension_semantics=("parallel", "arbitrary")
        ),
        cost_estimate=pl.CostEstimate(
            flops=int(flops), transcendentals=0, bytes_accessed=bytes_accessed
        ),
    )(*args)


# ---------------------------------------------------------------------------
# graph preprocessing (plain JAX glue)
# ---------------------------------------------------------------------------
def build_norm_adj(edge_index, num_nodes):
    """PyG gcn_norm semantics (add_self_loops=True, improved=False):
       deg[i] = #in-edges of i (incl. self loop); norm_e = d_src^-1/2 * d_dst^-1/2;
       A[dst, src] = norm_e so that out = A @ x aggregates source features."""
    # TODO(synk): for large N build this block-sparse / directly in bf16 instead of a
    #             dense f32 N^2 scatter-add.
    src, dst = edge_index[0], edge_index[1]
    loop = jnp.arange(num_nodes, dtype=edge_index.dtype)
    src = jnp.concatenate([src, loop])
    dst = jnp.concatenate([dst, loop])
    w = jnp.ones(src.shape[0], dtype=jnp.float32)

    deg = jnp.zeros((num_nodes,), jnp.float32).at[dst].add(w)
    deg_inv_sqrt = jnp.where(deg > 0, 1.0 / jnp.sqrt(deg), 0.0)
    norm = deg_inv_sqrt[src] * w * deg_inv_sqrt[dst]

    a = jnp.zeros((num_nodes, num_nodes), jnp.float32).at[dst, src].add(norm)
    return a


# ---------------------------------------------------------------------------
# GCNEncoder forward
# ---------------------------------------------------------------------------
def gcn_encoder(x, edge_index, w1, b1, w2, b2):
    n, c_in = x.shape
    c_hid = w1.shape[1]
    c_out = w2.shape[1]

    a = build_norm_adj(edge_index, n)

    # pad node & channel dims to multiples of 128 (lane-dense tiles / stores)
    n_pad = _round_up(n, 128)
    cin_pad = _round_up(c_in, 128)
    chid_pad = _round_up(c_hid, 128)
    cout_pad = _round_up(c_out, 128)

    tm, tk = _agg_tiles(n_pad)
    tm_proj = _largest_divisor_tile(n_pad, (512, 256, 128))

    a_pad = _pad2d(a, n_pad, n_pad).astype(jnp.bfloat16)            # bf16: halve A traffic
    x_pad = _pad2d(x, n_pad, cin_pad).astype(jnp.bfloat16)          # bf16 MXU feed
    w1_pad = _pad2d(w1, cin_pad, chid_pad).astype(jnp.bfloat16)
    w2_pad = _pad2d(w2, chid_pad, cout_pad).astype(jnp.bfloat16)
    b1_pad = _pad2d(b1.reshape(1, -1).astype(jnp.float32), 1, chid_pad)
    b2_pad = _pad2d(b2.reshape(1, -1).astype(jnp.float32), 1, cout_pad)

    # ---- layer 1 (+ fused layer-2 projection):  Z2 = relu(A @ (X @ W1) + b1) @ W2 ----
    z1 = _project(x_pad, w1_pad, out_dtype=jnp.bfloat16, tm=tm_proj)
    z2 = _gcn_aggregate(
        a_pad, z1, b1_pad, w2_pad,
        out_dtype=jnp.bfloat16, tm=tm, tk=tk,
        z_resident=_z_resident_ok(n_pad, chid_pad),
    )

    # ---- layer 2 aggregation:  O = A @ Z2 + b2 ----
    o = _gcn_aggregate(
        a_pad, z2, b2_pad, None,
        out_dtype=jnp.float32, tm=tm, tk=tk,
        z_resident=_z_resident_ok(n_pad, cout_pad),
    )

    return o[:n, :c_out]


def reference_gcn_encoder(x, edge_index, w1, b1, w2, b2):
    """Pure-JAX f32 reference of the same math for a sanity check."""
    a = build_norm_adj(edge_index, x.shape[0])
    h = jnp.maximum(a @ (x @ w1) + b1, 0.0)
    return a @ (h @ w2) + b2


if __name__ == "__main__":
    key = jax.random.PRNGKey(0)
    k_x, k_e, k_w1, k_w2 = jax.random.split(key, 4)

    num_nodes = 16
    in_channels = 4
    hidden_channels = 32
    out_channels = 16
    num_edges = 40

    # node features
    x = jax.random.normal(k_x, (num_nodes, in_channels), dtype=jnp.float32)

    # random directed edges (edge_index shape (2, E), like PyG)
    edge_index = jax.random.randint(k_e, (2, num_edges), 0, num_nodes, dtype=jnp.int32)

    # deterministic parameter init (glorot-uniform weights, zero bias, like GCNConv)
    def glorot(k, shape):
        limit = jnp.sqrt(6.0 / (shape[0] + shape[1]))
        return jax.random.uniform(k, shape, jnp.float32, -limit, limit)

    w1 = glorot(k_w1, (in_channels, hidden_channels))
    b1 = jnp.zeros((hidden_channels,), jnp.float32)
    w2 = glorot(k_w2, (hidden_channels, out_channels))
    b2 = jnp.zeros((out_channels,), jnp.float32)

    gcn_encoder_jit = jax.jit(gcn_encoder)
    out = gcn_encoder_jit(x, edge_index, w1, b1, w2, b2)
    out = jax.block_until_ready(out)

    ref = reference_gcn_encoder(x, edge_index, w1, b1, w2, b2)
    assert out.shape == (num_nodes, out_channels)
    # bf16 A / intermediates with f32 accumulation vs an f32 reference.
    err = float(jnp.max(jnp.abs(out - ref)))
    assert jnp.allclose(out, ref, atol=5e-2, rtol=5e-2), err

    print("KERNEL_OK")
</pallas_src>

<mosaic_0001>
module attributes {stable_mosaic.version = 11 : i64} {
  func.func @_project_kernel(%arg0: i32, %arg1: memref<128x128xbf16, #tpu.memory_space<vmem>>, %arg2: memref<128x128xbf16, #tpu.memory_space<vmem>>, %arg3: memref<128x128xbf16, #tpu.memory_space<vmem>>) attributes {dimension_semantics = [#tpu.dimension_semantics<parallel>], iteration_bounds = array<i64: 1>, scalar_prefetch = 0 : i64, scratch_operands = 0 : i64, tpu.core_type = #tpu.core_type<tc>, window_params = [{transform_indices = @transform_0, window_bounds = array<i64: 128, 128>}, {pipeline_mode = #tpu.pipeline_mode<synchronous>, transform_indices = @transform_1, window_bounds = array<i64: 128, 128>}, {transform_indices = @transform_2, window_bounds = array<i64: 128, 128>}]} {
    %c0 = arith.constant 0 : index
    %c0_0 = arith.constant 0 : index
    %0 = vector.load %arg1[%c0, %c0_0] : memref<128x128xbf16, #tpu.memory_space<vmem>>, vector<128x128xbf16>
    %c0_1 = arith.constant 0 : index
    %c0_2 = arith.constant 0 : index
    %1 = vector.load %arg2[%c0_1, %c0_2] : memref<128x128xbf16, #tpu.memory_space<vmem>>, vector<128x128xbf16>
    %cst = arith.constant dense<0.000000e+00> : vector<128x128xf32>
    %2 = tpu.matmul %0, %1, %cst {dimension_numbers = #tpu.dot_dimension_numbers<[1], [0], [0], [1], [0, 0, 1, 1], [], []>} : vector<128x128xbf16>, vector<128x128xbf16>, vector<128x128xf32> -> vector<128x128xf32>
    %3 = arith.truncf %2 : vector<128x128xf32> to vector<128x128xbf16>
    %c0_3 = arith.constant 0 : index
    %c0_4 = arith.constant 0 : index
    %4 = vector.load %arg3[%c0_3, %c0_4] : memref<128x128xbf16, #tpu.memory_space<vmem>>, vector<128x128xbf16>
    tpu.vector_store %arg3[%c0_3, %c0_4], %3 {strides = array<i32>} : memref<128x128xbf16, #tpu.memory_space<vmem>>, vector<128x128xbf16>,
    return
  }
  func.func @transform_0(%arg0: i32) -> (i32, i32) {
    %c0_i32 = arith.constant 0 : i32
    %c0_i32_0 = arith.constant 0 : i32
    return %arg0, %c0_i32 : i32, i32
  }
  func.func @transform_1(%arg0: i32) -> (i32, i32) {
    %c0_i32 = arith.constant 0 : i32
    %c0_i32_0 = arith.constant 0 : i32
    %c0_i32_1 = arith.constant 0 : i32
    return %c0_i32, %c0_i32_0 : i32, i32
  }
  func.func @transform_2(%arg0: i32) -> (i32, i32) {
    %c0_i32 = arith.constant 0 : i32
    %c0_i32_0 = arith.constant 0 : i32
    return %arg0, %c0_i32 : i32, i32
  }
}

module attributes {stable_mosaic.version = 11 : i64} {
  func.func @_agg_fused_kernel(%arg0: i32, %arg1: i32, %arg2: memref<128x128xbf16, #tpu.memory_space<vmem>>, %arg3: memref<128x128xbf16, #tpu.memory_space<vmem>>, %arg4: memref<1x128xf32, #tpu.memory_space<vmem>>, %arg5: memref<128x128xbf16, #tpu.memory_space<vmem>>, %arg6: memref<128x128xbf16, #tpu.memory_space<vmem>>, %arg7: memref<128x128xf32, #tpu.memory_space<vmem>>) attributes {dimension_semantics = [#tpu.dimension_semantics<parallel>, #tpu.dimension_semantics<arbitrary>], iteration_bounds = array<i64: 1, 1>, scalar_prefetch = 0 : i64, scratch_operands = 1 : i64, tpu.core_type = #tpu.core_type<tc>, window_params = [{transform_indices = @transform_0, window_bounds = array<i64: 128, 128>}, {pipeline_mode = #tpu.pipeline_mode<synchronous>, transform_indices = @transform_1, window_bounds = array<i64: 128, 128>}, {pipeline_mode = #tpu.pipeline_mode<synchronous>, transform_indices = @transform_2, window_bounds = array<i64: 1, 128>}, {pipeline_mode = #tpu.pipeline_mode<synchronous>, transform_indices = @transform_3, window_bounds = array<i64: 128, 128>}, {transform_indices = @transform_4, window_bounds = array<i64: 128, 128>}]} {
    %c0_i32 = arith.constant 0 : i32
    %0 = arith.cmpi eq, %arg1, %c0_i32 : i32
    %1 = arith.extui %0 : i1 to i32
    %c0_i32_0 = arith.constant 0 : i32
    %2 = arith.cmpi ne, %1, %c0_i32_0 : i32
    scf.if %2 {
      %c0_9 = arith.constant 0 : index
      %c0_10 = arith.constant 0 : index
      %15 = vector.load %arg4[%c0_9, %c0_10] : memref<1x128xf32, #tpu.memory_space<vmem>>, vector<1x128xf32>
      %16 = vector.shape_cast %15 : vector<1x128xf32> to vector<1x128xf32>
      %17 = vector.broadcast %16 : vector<1x128xf32> to vector<128x128xf32>
      %c0_11 = arith.constant 0 : index
      %c0_12 = arith.constant 0 : index
      %18 = vector.load %arg7[%c0_11, %c0_12] : memref<128x128xf32, #tpu.memory_space<vmem>>, vector<128x128xf32>
      tpu.vector_store %arg7[%c0_11, %c0_12], %17 {strides = array<i32>} : memref<128x128xf32, #tpu.memory_space<vmem>>, vector<128x128xf32>,
    } else {
    }
    %c0 = arith.constant 0 : index
    %c0_1 = arith.constant 0 : index
    %3 = vector.load %arg7[%c0, %c0_1] : memref<128x128xf32, #tpu.memory_space<vmem>>, vector<128x128xf32>
    %c0_2 = arith.constant 0 : index
    %c0_3 = arith.constant 0 : index
    %4 = vector.load %arg2[%c0_2, %c0_3] : memref<128x128xbf16, #tpu.memory_space<vmem>>, vector<128x128xbf16>
    %c128_i32 = arith.constant 128 : i32
    %5 = arith.muli %arg1, %c128_i32 : i32
    %6 = tpu.assume_multiple %5, 128 : i32
    %7 = arith.index_cast %6 : i32 to index
    %c0_4 = arith.constant 0 : index
    %8 = vector.load %arg3[%7, %c0_4] : memref<128x128xbf16, #tpu.memory_space<vmem>>, vector<128x128xbf16>
    %cst = arith.constant dense<0.000000e+00> : vector<128x128xf32>
    %9 = tpu.matmul %4, %8, %cst {dimension_numbers = #tpu.dot_dimension_numbers<[1], [0], [0], [1], [0, 0, 1, 1], [], []>} : vector<128x128xbf16>, vector<128x128xbf16>, vector<128x128xf32> -> vector<128x128xf32>
    %10 = arith.addf %3, %9 : vector<128x128xf32>
    %c0_5 = arith.constant 0 : index
    %c0_6 = arith.constant 0 : index
    %11 = vector.load %arg7[%c0_5, %c0_6] : memref<128x128xf32, #tpu.memory_space<vmem>>, vector<128x128xf32>
    tpu.vector_store %arg7[%c0_5, %c0_6], %10 {strides = array<i32>} : memref<128x128xf32, #tpu.memory_space<vmem>>, vector<128x128xf32>,
    %c0_i32_7 = arith.constant 0 : i32
    %12 = arith.cmpi eq, %arg1, %c0_i32_7 : i32
    %13 = arith.extui %12 : i1 to i32
    %c0_i32_8 = arith.constant 0 : i32
    %14 = arith.cmpi ne, %13, %c0_i32_8 : i32
    scf.if %14 {
      %c0_9 = arith.constant 0 : index
      %c0_10 = arith.constant 0 : index
      %15 = vector.load %arg7[%c0_9, %c0_10] : memref<128x128xf32, #tpu.memory_space<vmem>>, vector<128x128xf32>
      %cst_11 = arith.constant 0.000000e+00 : f32
      %16 = vector.broadcast %cst_11 : f32 to vector<128x128xf32>
      %17 = arith.maximumf %15, %16 : vector<128x128xf32>
      %18 = arith.truncf %17 : vector<128x128xf32> to vector<128x128xbf16>
      %c0_12 = arith.constant 0 : index
      %c0_13 = arith.constant 0 : index
      %19 = vector.load %arg5[%c0_12, %c0_13] : memref<128x128xbf16, #tpu.memory_space<vmem>>, vector<128x128xbf16>
      %cst_14 = arith.constant dense<0.000000e+00> : vector<128x128xf32>
      %20 = tpu.matmul %18, %19, %cst_14 {dimension_numbers = #tpu.dot_dimension_numbers<[1], [0], [0], [1], [0, 0, 1, 1], [], []>} : vector<128x128xbf16>, vector<128x128xbf16>, vector<128x128xf32> -> vector<128x128xf32>
      %21 = arith.truncf %20 : vector<128x128xf32> to vector<128x128xbf16>
      %c0_15 = arith.constant 0 : index
      %c0_16 = arith.constant 0 : index
      %22 = vector.load %arg6[%c0_15, %c0_16] : memref<128x128xbf16, #tpu.memory_space<vmem>>, vector<128x128xbf16>
      tpu.vector_store %arg6[%c0_15, %c0_16], %21 {strides = array<i32>} : memref<128x128xbf16, #tpu.memory_space<vmem>>, vector<128x128xbf16>,
    } else {
    }
    return
  }
  func.func @transform_0(%arg0: i32, %arg1: i32) -> (i32, i32) {
    %c0_i32 = arith.constant 0 : i32
    return %arg0, %arg1 : i32, i32
  }
  func.func @transform_1(%arg0: i32, %arg1: i32) -> (i32, i32) {
    %c0_i32 = arith.constant 0 : i32
    %c0_i32_0 = arith.constant 0 : i32
    %c0_i32_1 = arith.constant 0 : i32
    return %c0_i32, %c0_i32_0 : i32, i32
  }
  func.func @transform_2(%arg0: i32, %arg1: i32) -> (i32, i32) {
    %c0_i32 = arith.constant 0 : i32
    %c0_i32_0 = arith.constant 0 : i32
    %c0_i32_1 = arith.constant 0 : i32
    return %c0_i32, %c0_i32_0 : i32, i32
  }
  func.func @transform_3(%arg0: i32, %arg1: i32) -> (i32, i32) {
    %c0_i32 = arith.constant 0 : i32
    %c0_i32_0 = arith.constant 0 : i32
    %c0_i32_1 = arith.constant 0 : i32
    return %c0_i32, %c0_i32_0 : i32, i32
  }
  func.func @transform_4(%arg0: i32, %arg1: i32) -> (i32, i32) {
    %c0_i32 = arith.constant 0 : i32
    %c0_i32_0 = arith.constant 0 : i32
    return %arg0, %c0_i32 : i32, i32
  }
}

module attributes {stable_mosaic.version = 11 : i64} {
  func.func @_agg_kernel(%arg0: i32, %arg1: i32, %arg2: memref<128x128xbf16, #tpu.memory_space<vmem>>, %arg3: memref<128x128xbf16, #tpu.memory_space<vmem>>, %arg4: memref<1x128xf32, #tpu.memory_space<vmem>>, %arg5: memref<128x128xf32, #tpu.memory_space<vmem>>, %arg6: memref<128x128xf32, #tpu.memory_space<vmem>>) attributes {dimension_semantics = [#tpu.dimension_semantics<parallel>, #tpu.dimension_semantics<arbitrary>], iteration_bounds = array<i64: 1, 1>, scalar_prefetch = 0 : i64, scratch_operands = 1 : i64, tpu.core_type = #tpu.core_type<tc>, window_params = [{transform_indices = @transform_0, window_bounds = array<i64: 128, 128>}, {pipeline_mode = #tpu.pipeline_mode<synchronous>, transform_indices = @transform_1, window_bounds = array<i64: 128, 128>}, {pipeline_mode = #tpu.pipeline_mode<synchronous>, transform_indices = @transform_2, window_bounds = array<i64: 1, 128>}, {transform_indices = @transform_3, window_bounds = array<i64: 128, 128>}]} {
    %c0_i32 = arith.constant 0 : i32
    %0 = arith.cmpi eq, %arg1, %c0_i32 : i32
    %1 = arith.extui %0 : i1 to i32
    %c0_i32_0 = arith.constant 0 : i32
    %2 = arith.cmpi ne, %1, %c0_i32_0 : i32
    scf.if %2 {
      %c0_9 = arith.constant 0 : index
      %c0_10 = arith.constant 0 : index
      %15 = vector.load %arg4[%c0_9, %c0_10] : memref<1x128xf32, #tpu.memory_space<vmem>>, vector<1x128xf32>
      %16 = vector.shape_cast %15 : vector<1x128xf32> to vector<1x128xf32>
      %17 = vector.broadcast %16 : vector<1x128xf32> to vector<128x128xf32>
      %c0_11 = arith.constant 0 : index
      %c0_12 = arith.constant 0 : index
      %18 = vector.load %arg6[%c0_11, %c0_12] : memref<128x128xf32, #tpu.memory_space<vmem>>, vector<128x128xf32>
      tpu.vector_store %arg6[%c0_11, %c0_12], %17 {strides = array<i32>} : memref<128x128xf32, #tpu.memory_space<vmem>>, vector<128x128xf32>,
    } else {
    }
    %c0 = arith.constant 0 : index
    %c0_1 = arith.constant 0 : index
    %3 = vector.load %arg6[%c0, %c0_1] : memref<128x128xf32, #tpu.memory_space<vmem>>, vector<128x128xf32>
    %c0_2 = arith.constant 0 : index
    %c0_3 = arith.constant 0 : index
    %4 = vector.load %arg2[%c0_2, %c0_3] : memref<128x128xbf16, #tpu.memory_space<vmem>>, vector<128x128xbf16>
    %c128_i32 = arith.constant 128 : i32
    %5 = arith.muli %arg1, %c128_i32 : i32
    %6 = tpu.assume_multiple %5, 128 : i32
    %7 = arith.index_cast %6 : i32 to index
    %c0_4 = arith.constant 0 : index
    %8 = vector.load %arg3[%7, %c0_4] : memref<128x128xbf16, #tpu.memory_space<vmem>>, vector<128x128xbf16>
    %cst = arith.constant dense<0.000000e+00> : vector<128x128xf32>
    %9 = tpu.matmul %4, %8, %cst {dimension_numbers = #tpu.dot_dimension_numbers<[1], [0], [0], [1], [0, 0, 1, 1], [], []>} : vector<128x128xbf16>, vector<128x128xbf16>, vector<128x128xf32> -> vector<128x128xf32>
    %10 = arith.addf %3, %9 : vector<128x128xf32>
    %c0_5 = arith.constant 0 : index
    %c0_6 = arith.constant 0 : index
    %11 = vector.load %arg6[%c0_5, %c0_6] : memref<128x128xf32, #tpu.memory_space<vmem>>, vector<128x128xf32>
    tpu.vector_store %arg6[%c0_5, %c0_6], %10 {strides = array<i32>} : memref<128x128xf32, #tpu.memory_space<vmem>>, vector<128x128xf32>,
    %c0_i32_7 = arith.constant 0 : i32
    %12 = arith.cmpi eq, %arg1, %c0_i32_7 : i32
    %13 = arith.extui %12 : i1 to i32
    %c0_i32_8 = arith.constant 0 : i32
    %14 = arith.cmpi ne, %13, %c0_i32_8 : i32
    scf.if %14 {
      %c0_9 = arith.constant 0 : index
      %c0_10 = arith.constant 0 : index
      %15 = vector.load %arg6[%c0_9, %c0_10] : memref<128x128xf32, #tpu.memory_space<vmem>>, vector<128x128xf32>
      %c0_11 = arith.constant 0 : index
      %c0_12 = arith.constant 0 : index
      %16 = vector.load %arg5[%c0_11, %c0_12] : memref<128x128xf32, #tpu.memory_space<vmem>>, vector<128x128xf32>
      tpu.vector_store %arg5[%c0_11, %c0_12], %15 {strides = array<i32>} : memref<128x128xf32, #tpu.memory_space<vmem>>, vector<128x128xf32>,
    } else {
    }
    return
  }
  func.func @transform_0(%arg0: i32, %arg1: i32) -> (i32, i32) {
    %c0_i32 = arith.constant 0 : i32
    return %arg0, %arg1 : i32, i32
  }
  func.func @transform_1(%arg0: i32, %arg1: i32) -> (i32, i32) {
    %c0_i32 = arith.constant 0 : i32
    %c0_i32_0 = arith.constant 0 : i32
    %c0_i32_1 = arith.constant 0 : i32
    return %c0_i32, %c0_i32_0 : i32, i32
  }
  func.func @transform_2(%arg0: i32, %arg1: i32) -> (i32, i32) {
    %c0_i32 = arith.constant 0 : i32
    %c0_i32_0 = arith.constant 0 : i32
    %c0_i32_1 = arith.constant 0 : i32
    return %c0_i32, %c0_i32_0 : i32, i32
  }
  func.func @transform_3(%arg0: i32, %arg1: i32) -> (i32, i32) {
    %c0_i32 = arith.constant 0 : i32
    %c0_i32_0 = arith.constant 0 : i32
    return %arg0, %c0_i32 : i32, i32
  }
}

</mosaic_0001>

<bundles_post_ra>
// kernel: mul.1
= control target key start
LH: loop header
LB: loop body
LE: loop exit
PB: predicated region body
PF: predicated region fallthrough
CT: control target
= control target key end

     0   :  { %s34_s0 = inlined_call_operand.vmem [shape: f32[56], index: 0, kind: input, shape index: {}]   ;;  %s35_s1 = inlined_call_operand.vmem [shape: f32[56], index: 1, kind: input, shape index: {}]   ;;  %s36_s2 = inlined_call_operand.vmem [shape: f32[56], index: 2, kind: output, shape index: {}]  }
   0x1   :  { %v3_v0 = vld [vmem:[%s34_s0] sm:$0x1] }
   0x2   :  { %v4_v1 = vld [vmem:[%s35_s1] sm:$0x1] }
   0x3   :  { %v7_v2 = vmul.f32 %v4_v1, %v3_v0 }
   0x5   :  { %9 = vst [vmem:[%s36_s2] sm:$0x1] %v7_v2 }

// kernel: gcn_encoder.3
= control target key start
LH: loop header
LB: loop body
LE: loop exit
PB: predicated region body
PF: predicated region fallthrough
CT: control target
= control target key end

     0   :  { %s583_s1 = inlined_call_operand.vmem [shape: bf16[128,128], index: 1, kind: input, shape index: {}]   ;;  %s584_s0 = inlined_call_operand.vmem [shape: bf16[128,128], index: 0, kind: input, shape index: {}]   ;;  %s585_s2 = inlined_call_operand.vmem [shape: bf16[128,128], index: 2, kind: output, shape index: {}]  }
   0x1   :  { %v480_v0 = vld [vmem:[%s583_s1] sm:$0xff]   ;;  %v481_v1 = vld [vmem:[%s583_s1 + $0x8] sm:$0xff]   ;;  %v482_v2 = vld [vmem:[%s583_s1 + $0x10] sm:$0xff]  }
   0x2   :  { %432 = vmatprep.subr.bf16.mxu0 %v480_v0  ;;  %464 = vmatprep.subr.bf16.mxu1 %v480_v0  ;;  %v483_v3 = vld [vmem:[%s583_s1 + $0x18] sm:$0xff]   ;;  %v488_v4 = vld [vmem:[%s584_s0] sm:$0xff]   ;;  %v485_v7 = vld [vmem:[%s583_s1 + $0x28] sm:$0xff]  }
   0x3   :  { %433 = vmatpush3.bf16.msra.mxu0 %v480_v0  ;;  %472 = vmatpush3.bf16.msra.mxu1 %v480_v0  ;;  %v489_v5 = vld [vmem:[%s584_s0 + $0x20] sm:$0xff]   ;;  %v486_v8 = vld [vmem:[%s583_s1 + $0x30] sm:$0xff]   ;;  %v487_v9 = vld [vmem:[%s583_s1 + $0x38] sm:$0xff]  }
   0x4   :  { %434 = vmatprep.subr.bf16.mxu0 %v481_v1  ;;  %465 = vmatprep.subr.bf16.mxu1 %v481_v1  ;;  %v484_v6 = vld [vmem:[%s583_s1 + $0x20] sm:$0xff]   ;;  %v490_v10 = vld [vmem:[%s584_s0 + $0x8] sm:$0xff]   ;;  %v492_v12 = vld [vmem:[%s584_s0 + $0x10] sm:$0xff]  }
   0x5   :  { %448 = vmatprep.mubr.bf16.mxu0 %v488_v4  ;;  %456 = vmatprep.mubr.bf16.mxu1 %v489_v5  ;;  %v491_v11 = vld [vmem:[%s584_s0 + $0x28] sm:$0xff]   ;;  %v493_v13 = vld [vmem:[%s584_s0 + $0x30] sm:$0xff]   ;;  %v494_v14 = vld [vmem:[%s584_s0 + $0x18] sm:$0xff]  }
   0x6   :  { %v495_v15 = vld [vmem:[%s584_s0 + $0x38] sm:$0xff]  }
   0x7   :  { %435 = vmatpush3.bf16.msra.mxu0 %v481_v1  ;;  %473 = vmatpush3.bf16.msra.mxu1 %v481_v1 }
   0x8   :  { %436 = vmatprep.subr.bf16.mxu0 %v482_v2  ;;  %466 = vmatprep.subr.bf16.mxu1 %v482_v2 }
   0xb   :  { %437 = vmatpush3.bf16.msra.mxu0 %v482_v2  ;;  %474 = vmatpush3.bf16.msra.mxu1 %v482_v2 }
   0xc   :  { %438 = vmatprep.subr.bf16.mxu0 %v483_v3  ;;  %467 = vmatprep.subr.bf16.mxu1 %v483_v3 }
   0xf   :  { %439 = vmatpush3.bf16.msra.mxu0 %v483_v3  ;;  %475 = vmatpush3.bf16.msra.mxu1 %v483_v3 }
  0x10   :  { %440 = vmatprep.subr.bf16.mxu0 %v484_v6  ;;  %468 = vmatprep.subr.bf16.mxu1 %v484_v6 }
  0x13   :  { %441 = vmatpush3.bf16.msra.mxu0 %v484_v6  ;;  %476 = vmatpush3.bf16.msra.mxu1 %v484_v6 }
  0x14   :  { %442 = vmatprep.subr.bf16.mxu0 %v485_v7  ;;  %469 = vmatprep.subr.bf16.mxu1 %v485_v7 }
  0x17   :  { %443 = vmatpush3.bf16.msra.mxu0 %v485_v7  ;;  %477 = vmatpush3.bf16.msra.mxu1 %v485_v7 }
  0x18   :  { %444 = vmatprep.subr.bf16.mxu0 %v486_v8  ;;  %470 = vmatprep.subr.bf16.mxu1 %v486_v8 }
  0x1b   :  { %445 = vmatpush3.bf16.msra.mxu0 %v486_v8  ;;  %478 = vmatpush3.bf16.msra.mxu1 %v486_v8 }
  0x1c   :  { %446 = vmatprep.subr.bf16.mxu0 %v487_v9  ;;  %471 = vmatprep.subr.bf16.mxu1 %v487_v9 }
  0x1f   :  { %447 = vmatpush3.bf16.msra.mxu0 %v487_v9  ;;  %479 = vmatpush3.bf16.msra.mxu1 %v487_v9 }
  0x22   :  { %449 = vmatmul.mubr.bf16.vlgmr.msra.gmra.mrb[0].mxu0 %v490_v10  ;;  %457 = vmatmul.mubr.bf16.vlgmr.msra.gmra.mrb[0].mxu1 %v491_v11 }
  0x23   :  { %452 = vmatprep.mubr.bf16.mxu0 %v492_v12  ;;  %460 = vmatprep.mubr.bf16.mxu1 %v493_v13 }
  0x2a   :  { %453 = vmatmul.mubr.bf16.gmra.mrb[4].mxu0 %v494_v14  ;;  %461 = vmatmul.mubr.bf16.gmra.mrb[4].mxu1 %v495_v15 }
  0xf5   :  { %v450_v16 = vpop.f32.mrb[0].mxu0  ;;  %v458_v17 = vpop.f32.mrb[0].mxu1 }
  0xf6   :  { %v174_v18 = vpop.f32.mrb[1].mxu0  ;;  %v206_v19 = vpop.f32.mrb[1].mxu1 }
  0xf7   :  { %v451_v20 = vpop.f32.mrb[2].mxu0  ;;  %v459_v21 = vpop.f32.mrb[2].mxu1 }
  0xf8   :  { %v377_v22 = vpack.c.bf16 %v451_v20, %v450_v16  ;;  %v397_v23 = vpack.c.bf16 %v459_v21, %v458_v17  ;;  %v177_v24 = vpop.f32.mrb[3].mxu0  ;;  %v209_v25 = vpop.f32.mrb[3].mxu1 }
  0xf9   :  { %v372_v26 = vpack.c.bf16 %v177_v24, %v174_v18  ;;  %v392_v27 = vpack.c.bf16 %v209_v25, %v206_v19 }
  0xfa   :  { %409 = vst [vmem:[%s585_s2 + $0x8] sm:$0xff] %v377_v22   ;;  %413 = vst [vmem:[%s585_s2 + $0x28] sm:$0xff] %v397_v23  }
  0xfb   :  { %373 = vst [vmem:[%s585_s2] sm:$0xff] %v372_v26   ;;  %412 = vst [vmem:[%s585_s2 + $0x20] sm:$0xff] %v392_v27  }
  0xfd   :  { %v454_v28 = vpop.f32.mrb[4].mxu0  ;;  %v462_v29 = vpop.f32.mrb[4].mxu1 }
  0xfe   :  { %v190_v30 = vpop.f32.mrb[5].mxu0  ;;  %v222_v31 = vpop.f32.mrb[5].mxu1 }
  0xff   :  { %v455_v32 = vpop.f32.mrb[6].mxu0  ;;  %v463_v33 = vpop.f32.mrb[6].mxu1 }
 0x100   :  { %v387_v34 = vpack.c.bf16 %v455_v32, %v454_v28  ;;  %v407_v35 = vpack.c.bf16 %v463_v33, %v462_v29  ;;  %v193_v36 = vpop.f32.mrb[7].mxu0  ;;  %v225_v37 = vpop.f32.mrb[7].mxu1 }
 0x101   :  { %v382_v38 = vpack.c.bf16 %v193_v36, %v190_v30  ;;  %v402_v39 = vpack.c.bf16 %v225_v37, %v222_v31 }
 0x102   :  { %411 = vst [vmem:[%s585_s2 + $0x18] sm:$0xff] %v387_v34   ;;  %415 = vst [vmem:[%s585_s2 + $0x38] sm:$0xff] %v407_v35  }
 0x103   :  { %410 = vst [vmem:[%s585_s2 + $0x10] sm:$0xff] %v382_v38   ;;  %414 = vst [vmem:[%s585_s2 + $0x30] sm:$0xff] %v402_v39  }

// kernel: gcn_encoder.4
= control target key start
LH: loop header
LB: loop body
LE: loop exit
PB: predicated region body
PF: predicated region fallthrough
CT: control target
= control target key end

     0   :  { %s961_s1 = inlined_call_operand.vmem [shape: bf16[128,128], index: 1, kind: input, shape index: {}]   ;;  %s962_s0 = inlined_call_operand.vmem [shape: bf16[128,128], index: 0, kind: input, shape index: {}]   ;;  %s963_s3 = inlined_call_operand.vmem [shape: bf16[128,128], index: 3, kind: input, shape index: {}]   ;;  %s964_s2 = inlined_call_operand.vmem [shape: f32[1,128], index: 2, kind: input, shape index: {}]   ;;  %s965_s4 = inlined_call_operand.vmem [shape: bf16[128,128], index: 4, kind: output, shape index: {}]  }
   0x1   :  { %v813_v0 = vld [vmem:[%s961_s1] sm:$0xff]   ;;  %v814_v1 = vld [vmem:[%s961_s1 + $0x8] sm:$0xff]   ;;  %v815_v2 = vld [vmem:[%s961_s1 + $0x10] sm:$0xff]  }
   0x2   :  { %749 = vmatprep.subr.bf16.mxu0 %v813_v0  ;;  %v816_v3 = vld [vmem:[%s961_s1 + $0x18] sm:$0xff]   ;;  %v821_v4 = vld [vmem:[%s962_s0] sm:$0xff]   ;;  %v818_v6 = vld [vmem:[%s961_s1 + $0x28] sm:$0xff]  }
   0x3   :  { %750 = vmatpush3.bf16.msra.mxu0 %v813_v0  ;;  %765 = vmatprep.mubr.bf16.mxu0 %v821_v4  ;;  %v817_v5 = vld [vmem:[%s961_s1 + $0x20] sm:$0xff]   ;;  %v830_v8 = vld [vmem:[%s963_s3 + $0x8] sm:$0xff]   ;;  %v819_v9 = vld [vmem:[%s961_s1 + $0x30] sm:$0xff]  }
   0x4   :  { %751 = vmatprep.subr.bf16.mxu0 %v814_v1  ;;  %v829_v7 = vld [vmem:[%s963_s3] sm:$0xff]   ;;  %v831_v10 = vld [vmem:[%s963_s3 + $0x10] sm:$0xff]   ;;  %v820_v11 = vld [vmem:[%s961_s1 + $0x38] sm:$0xff]  }
   0x5   :  { %781 = vmatprep.subr.bf16.mxu1 %v829_v7  ;;  %v832_v12 = vld [vmem:[%s963_s3 + $0x18] sm:$0xff]   ;;  %v833_v13 = vld [vmem:[%s963_s3 + $0x20] sm:$0xff]   ;;  %v822_v14 = vld [vmem:[%s962_s0 + $0x8] sm:$0xff]  }
   0x6   :  { %782 = vmatpush3.bf16.msra.mxu1 %v829_v7  ;;  %v823_v15 = vld [vmem:[%s962_s0 + $0x10] sm:$0xff]   ;;  %v834_v16 = vld [vmem:[%s963_s3 + $0x28] sm:$0xff]   ;;  %v824_v17 = vld [vmem:[%s962_s0 + $0x18] sm:$0xff]  }
   0x7   :  { %752 = vmatpush3.bf16.msra.mxu0 %v814_v1  ;;  %783 = vmatprep.subr.bf16.mxu1 %v830_v8  ;;  %v825_v18 = vld [vmem:[%s962_s0 + $0x20] sm:$0xff]   ;;  %v826_v19 = vld [vmem:[%s962_s0 + $0x28] sm:$0xff]   ;;  %v827_v20 = vld [vmem:[%s962_s0 + $0x30] sm:$0xff]  }
   0x8   :  { %753 = vmatprep.subr.bf16.mxu0 %v815_v2  ;;  %v828_v21 = vld [vmem:[%s962_s0 + $0x38] sm:$0xff]   ;;  %v835_v22 = vld [vmem:[%s963_s3 + $0x30] sm:$0xff]   ;;  %v613_v24 = vld [vmem:[%s964_s2] ss:$0 sm:$0xff] }
   0x9   :  { %v836_v23 = vld [vmem:[%s963_s3 + $0x38] sm:$0xff]  }
   0xa   :  { %784 = vmatpush3.bf16.msra.mxu1 %v830_v8 }
   0xb   :  { %754 = vmatpush3.bf16.msra.mxu0 %v815_v2  ;;  %785 = vmatprep.subr.bf16.mxu1 %v831_v10 }
   0xc   :  { %755 = vmatprep.subr.bf16.mxu0 %v816_v3 }
   0xe   :  { %786 = vmatpush3.bf16.msra.mxu1 %v831_v10 }
   0xf   :  { %756 = vmatpush3.bf16.msra.mxu0 %v816_v3  ;;  %787 = vmatprep.subr.bf16.mxu1 %v832_v12 }
  0x10   :  { %757 = vmatprep.subr.bf16.mxu0 %v817_v5 }
  0x12   :  { %788 = vmatpush3.bf16.msra.mxu1 %v832_v12 }
  0x13   :  { %758 = vmatpush3.bf16.msra.mxu0 %v817_v5  ;;  %789 = vmatprep.subr.bf16.mxu1 %v833_v13 }
  0x14   :  { %759 = vmatprep.subr.bf16.mxu0 %v818_v6 }
  0x16   :  { %790 = vmatpush3.bf16.msra.mxu1 %v833_v13 }
  0x17   :  { %760 = vmatpush3.bf16.msra.mxu0 %v818_v6  ;;  %791 = vmatprep.subr.bf16.mxu1 %v834_v16 }
  0x18   :  { %761 = vmatprep.subr.bf16.mxu0 %v819_v9 }
  0x1a   :  { %792 = vmatpush3.bf16.msra.mxu1 %v834_v16 }
  0x1b   :  { %762 = vmatpush3.bf16.msra.mxu0 %v819_v9  ;;  %793 = vmatprep.subr.bf16.mxu1 %v835_v22 }
  0x1c   :  { %763 = vmatprep.subr.bf16.mxu0 %v820_v11 }
  0x1e   :  { %794 = vmatpush3.bf16.msra.mxu1 %v835_v22 }
  0x1f   :  { %764 = vmatpush3.bf16.msra.mxu0 %v820_v11  ;;  %795 = vmatprep.subr.bf16.mxu1 %v836_v23 }
  0x22   :  { %766 = vmatmul.mubr.bf16.vlgmr.msra.gmra.mrb[0].mxu0 %v822_v14  ;;  %796 = vmatpush3.bf16.msra.mxu1 %v836_v23 }
  0x23   :  { %769 = vmatprep.mubr.bf16.mxu0 %v823_v15 }
  0x2a   :  { %770 = vmatmul.mubr.bf16.gmra.mrb[4].mxu0 %v824_v17 }
  0x2b   :  { %773 = vmatprep.mubr.bf16.mxu0 %v825_v18 }
  0x32   :  { %774 = vmatmul.mubr.bf16.gmra.mrb[8].mxu0 %v826_v19 }
  0x33   :  { %777 = vmatprep.mubr.bf16.mxu0 %v827_v20 }
  0x3a   :  { %778 = vmatmul.mubr.bf16.gmra.mrb[12].mxu0 %v828_v21 }
  0xf5   :  { %v767_v25 = vpop.f32.mrb[0].mxu0 }
  0xf6   :  { %v293_v26 = vadd.f32 %v767_v25, %v613_v24  ;;  %v228_v27 = vpop.f32.mrb[1].mxu0 }
  0xf7   :  { %v291_v28 = vadd.f32 %v613_v24, %v228_v27  ;;  %v768_v29 = vpop.f32.mrb[2].mxu0 }
  0xf8   :  { %v294_v30 = vadd.f32 %v768_v29, %v613_v24  ;;  %v231_v31 = vpop.f32.mrb[3].mxu0  ;;  %v344_v33 = vmax.f32 %v293_v26, 0.0 }
  0xf9   :  { %v292_v32 = vadd.f32 %v613_v24, %v231_v31  ;;  %v342_v35 = vmax.f32 %v291_v28, 0.0 }
  0xfa   :  { %v345_v34 = vmax.f32 %v294_v30, 0.0 }
  0xfb   :  { %v343_v36 = vmax.f32 %v292_v32, 0.0 }
  0xfc   :  { %v359_v37 = vpack.c.bf16 %v345_v34, %v344_v33 }
  0xfd   :  { %v771_v38 = vpop.f32.mrb[4].mxu0  ;;  %v358_v39 = vpack.c.bf16 %v343_v36, %v342_v35 }
  0xfe   :  { %v297_v40 = vadd.f32 %v771_v38, %v613_v24  ;;  %v244_v41 = vpop.f32.mrb[5].mxu0 }
  0xff   :  { %v295_v42 = vadd.f32 %v613_v24, %v244_v41  ;;  %v772_v43 = vpop.f32.mrb[6].mxu0  ;;  %797 = vmatprep.mubr.bf16.mxu1 %v358_v39 }
 0x100   :  { %v298_v44 = vadd.f32 %v772_v43, %v613_v24  ;;  %v247_v45 = vpop.f32.mrb[7].mxu0  ;;  %798 = vmatmul.mubr.bf16.vlgmr.msra.gmra.mrb[0].mxu1 %v359_v37  ;;  %v348_v47 = vmax.f32 %v297_v40, 0.0 }
 0x101   :  { %v296_v46 = vadd.f32 %v613_v24, %v247_v45  ;;  %v346_v49 = vmax.f32 %v295_v42, 0.0 }
 0x102   :  { %v349_v48 = vmax.f32 %v298_v44, 0.0 }
 0x103   :  { %v347_v50 = vmax.f32 %v296_v46, 0.0 }
 0x104   :  { %v361_v51 = vpack.c.bf16 %v349_v48, %v348_v47 }
 0x105   :  { %v360_v52 = vpack.c.bf16 %v347_v50, %v346_v49  ;;  %v775_v53 = vpop.f32.mrb[8].mxu0 }
 0x106   :  { %v301_v54 = vadd.f32 %v775_v53, %v613_v24  ;;  %v260_v55 = vpop.f32.mrb[9].mxu0 }
 0x107   :  { %v299_v56 = vadd.f32 %v613_v24, %v260_v55  ;;  %v776_v57 = vpop.f32.mrb[10].mxu0  ;;  %801 = vmatprep.mubr.bf16.mxu1 %v360_v52 }
 0x108   :  { %v302_v58 = vadd.f32 %v776_v57, %v613_v24  ;;  %v263_v59 = vpop.f32.mrb[11].mxu0  ;;  %802 = vmatmul.mubr.bf16.gmra.mrb[4].mxu1 %v361_v51  ;;  %v352_v61 = vmax.f32 %v301_v54, 0.0 }
 0x109   :  { %v300_v60 = vadd.f32 %v613_v24, %v263_v59  ;;  %v350_v63 = vmax.f32 %v299_v56, 0.0 }
 0x10a   :  { %v353_v62 = vmax.f32 %v302_v58, 0.0 }
 0x10b   :  { %v351_v0 = vmax.f32 %v300_v60, 0.0 }
 0x10c   :  { %v363_v1 = vpack.c.bf16 %v353_v62, %v352_v61 }
 0x10d   :  { %v362_v2 = vpack.c.bf16 %v351_v0, %v350_v63  ;;  %v779_v3 = vpop.f32.mrb[12].mxu0 }
 0x10e   :  { %v305_v4 = vadd.f32 %v779_v3, %v613_v24  ;;  %v276_v5 = vpop.f32.mrb[13].mxu0 }
 0x10f   :  { %v303_v6 = vadd.f32 %v613_v24, %v276_v5  ;;  %v780_v7 = vpop.f32.mrb[14].mxu0  ;;  %805 = vmatprep.mubr.bf16.mxu1 %v362_v2 }
 0x110   :  { %v306_v8 = vadd.f32 %v780_v7, %v613_v24  ;;  %v279_v9 = vpop.f32.mrb[15].mxu0  ;;  %806 = vmatmul.mubr.bf16.gmra.mrb[8].mxu1 %v363_v1  ;;  %v356_v11 = vmax.f32 %v305_v4, 0.0 }
 0x111   :  { %v304_v10 = vadd.f32 %v613_v24, %v279_v9  ;;  %v354_v13 = vmax.f32 %v303_v6, 0.0 }
 0x112   :  { %v357_v12 = vmax.f32 %v306_v8, 0.0 }
 0x113   :  { %v355_v14 = vmax.f32 %v304_v10, 0.0 }
 0x114   :  { %v365_v15 = vpack.c.bf16 %v357_v12, %v356_v11 }
 0x115   :  { %v364_v16 = vpack.c.bf16 %v355_v14, %v354_v13 }
 0x117   :  { %809 = vmatprep.mubr.bf16.mxu1 %v364_v16 }
 0x118   :  { %810 = vmatmul.mubr.bf16.gmra.mrb[12].mxu1 %v365_v15 }
 0x1d3   :  { %v799_v17 = vpop.f32.mrb[0].mxu1 }
 0x1d4   :  { %v464_v18 = vpop.f32.mrb[1].mxu1 }
 0x1d5   :  { %v800_v19 = vpop.f32.mrb[2].mxu1 }
 0x1d6   :  { %v678_v20 = vpack.c.bf16 %v800_v19, %v799_v17  ;;  %v467_v21 = vpop.f32.mrb[3].mxu1 }
 0x1d7   :  { %v673_v22 = vpack.c.bf16 %v467_v21, %v464_v18 }
 0x1d8   :  { %710 = vst [vmem:[%s965_s4 + $0x8] sm:$0xff] %v678_v20  }
 0x1d9   :  { %674 = vst [vmem:[%s965_s4] sm:$0xff] %v673_v22  }
 0x1db   :  { %v803_v23 = vpop.f32.mrb[4].mxu1 }
 0x1dc   :  { %v480_v24 = vpop.f32.mrb[5].mxu1 }
 0x1dd   :  { %v804_v25 = vpop.f32.mrb[6].mxu1 }
 0x1de   :  { %v688_v26 = vpack.c.bf16 %v804_v25, %v803_v23  ;;  %v483_v27 = vpop.f32.mrb[7].mxu1 }
 0x1df   :  { %v683_v28 = vpack.c.bf16 %v483_v27, %v480_v24 }
 0x1e0   :  { %712 = vst [vmem:[%s965_s4 + $0x18] sm:$0xff] %v688_v26  }
 0x1e1   :  { %711 = vst [vmem:[%s965_s4 + $0x10] sm:$0xff] %v683_v28  }
 0x1e3   :  { %v807_v29 = vpop.f32.mrb[8].mxu1 }
 0x1e4   :  { %v496_v30 = vpop.f32.mrb[9].mxu1 }
 0x1e5   :  { %v808_v31 = vpop.f32.mrb[10].mxu1 }
 0x1e6   :  { %v698_v32 = vpack.c.bf16 %v808_v31, %v807_v29  ;;  %v499_v33 = vpop.f32.mrb[11].mxu1 }
 0x1e7   :  { %v693_v34 = vpack.c.bf16 %v499_v33, %v496_v30 }
 0x1e8   :  { %714 = vst [vmem:[%s965_s4 + $0x28] sm:$0xff] %v698_v32  }
 0x1e9   :  { %713 = vst [vmem:[%s965_s4 + $0x20] sm:$0xff] %v693_v34  }
 0x1eb   :  { %v811_v35 = vpop.f32.mrb[12].mxu1 }
 0x1ec   :  { %v512_v36 = vpop.f32.mrb[13].mxu1 }
 0x1ed   :  { %v812_v37 = vpop.f32.mrb[14].mxu1 }
 0x1ee   :  { %v708_v38 = vpack.c.bf16 %v812_v37, %v811_v35  ;;  %v515_v39 = vpop.f32.mrb[15].mxu1 }
 0x1ef   :  { %v703_v40 = vpack.c.bf16 %v515_v39, %v512_v36 }
 0x1f0   :  { %716 = vst [vmem:[%s965_s4 + $0x38] sm:$0xff] %v708_v38  }
 0x1f1   :  { %715 = vst [vmem:[%s965_s4 + $0x30] sm:$0xff] %v703_v40  }

// kernel: gcn_encoder.5
= control target key start
LH: loop header
LB: loop body
LE: loop exit
PB: predicated region body
PF: predicated region fallthrough
CT: control target
= control target key end

     0   :  { %s577_s1 = inlined_call_operand.vmem [shape: bf16[128,128], index: 1, kind: input, shape index: {}]   ;;  %s578_s0 = inlined_call_operand.vmem [shape: bf16[128,128], index: 0, kind: input, shape index: {}]   ;;  %s579_s2 = inlined_call_operand.vmem [shape: f32[1,128], index: 2, kind: input, shape index: {}]   ;;  %s580_s3 = inlined_call_operand.vmem [shape: f32[128,128], index: 3, kind: output, shape index: {}]  }
   0x1   :  { %v442_v0 = vld [vmem:[%s577_s1] sm:$0xff]   ;;  %v443_v1 = vld [vmem:[%s577_s1 + $0x8] sm:$0xff]   ;;  %v444_v2 = vld [vmem:[%s577_s1 + $0x10] sm:$0xff]  }
   0x2   :  { %394 = vmatprep.subr.bf16.mxu0 %v442_v0  ;;  %426 = vmatprep.subr.bf16.mxu1 %v442_v0  ;;  %v445_v3 = vld [vmem:[%s577_s1 + $0x18] sm:$0xff]   ;;  %v450_v4 = vld [vmem:[%s578_s0] sm:$0xff]   ;;  %v447_v7 = vld [vmem:[%s577_s1 + $0x28] sm:$0xff]  }
   0x3   :  { %395 = vmatpush3.bf16.msra.mxu0 %v442_v0  ;;  %434 = vmatpush3.bf16.msra.mxu1 %v442_v0  ;;  %v451_v5 = vld [vmem:[%s578_s0 + $0x20] sm:$0xff]   ;;  %v448_v8 = vld [vmem:[%s577_s1 + $0x30] sm:$0xff]   ;;  %v449_v9 = vld [vmem:[%s577_s1 + $0x38] sm:$0xff]  }
   0x4   :  { %396 = vmatprep.subr.bf16.mxu0 %v443_v1  ;;  %427 = vmatprep.subr.bf16.mxu1 %v443_v1  ;;  %v446_v6 = vld [vmem:[%s577_s1 + $0x20] sm:$0xff]   ;;  %v452_v10 = vld [vmem:[%s578_s0 + $0x8] sm:$0xff]   ;;  %v454_v12 = vld [vmem:[%s578_s0 + $0x10] sm:$0xff]  }
   0x5   :  { %410 = vmatprep.mubr.bf16.mxu0 %v450_v4  ;;  %418 = vmatprep.mubr.bf16.mxu1 %v451_v5  ;;  %v453_v11 = vld [vmem:[%s578_s0 + $0x28] sm:$0xff]   ;;  %v455_v13 = vld [vmem:[%s578_s0 + $0x30] sm:$0xff]   ;;  %v456_v14 = vld [vmem:[%s578_s0 + $0x18] sm:$0xff]  }
   0x6   :  { %v457_v15 = vld [vmem:[%s578_s0 + $0x38] sm:$0xff]   ;;  %v361_v16 = vld [vmem:[%s579_s2] ss:$0 sm:$0xff] }
   0x7   :  { %397 = vmatpush3.bf16.msra.mxu0 %v443_v1  ;;  %435 = vmatpush3.bf16.msra.mxu1 %v443_v1 }
   0x8   :  { %398 = vmatprep.subr.bf16.mxu0 %v444_v2  ;;  %428 = vmatprep.subr.bf16.mxu1 %v444_v2 }
   0xb   :  { %399 = vmatpush3.bf16.msra.mxu0 %v444_v2  ;;  %436 = vmatpush3.bf16.msra.mxu1 %v444_v2 }
   0xc   :  { %400 = vmatprep.subr.bf16.mxu0 %v445_v3  ;;  %429 = vmatprep.subr.bf16.mxu1 %v445_v3 }
   0xf   :  { %401 = vmatpush3.bf16.msra.mxu0 %v445_v3  ;;  %437 = vmatpush3.bf16.msra.mxu1 %v445_v3 }
  0x10   :  { %402 = vmatprep.subr.bf16.mxu0 %v446_v6  ;;  %430 = vmatprep.subr.bf16.mxu1 %v446_v6 }
  0x13   :  { %403 = vmatpush3.bf16.msra.mxu0 %v446_v6  ;;  %438 = vmatpush3.bf16.msra.mxu1 %v446_v6 }
  0x14   :  { %404 = vmatprep.subr.bf16.mxu0 %v447_v7  ;;  %431 = vmatprep.subr.bf16.mxu1 %v447_v7 }
  0x17   :  { %405 = vmatpush3.bf16.msra.mxu0 %v447_v7  ;;  %439 = vmatpush3.bf16.msra.mxu1 %v447_v7 }
  0x18   :  { %406 = vmatprep.subr.bf16.mxu0 %v448_v8  ;;  %432 = vmatprep.subr.bf16.mxu1 %v448_v8 }
  0x1b   :  { %407 = vmatpush3.bf16.msra.mxu0 %v448_v8  ;;  %440 = vmatpush3.bf16.msra.mxu1 %v448_v8 }
  0x1c   :  { %408 = vmatprep.subr.bf16.mxu0 %v449_v9  ;;  %433 = vmatprep.subr.bf16.mxu1 %v449_v9 }
  0x1f   :  { %409 = vmatpush3.bf16.msra.mxu0 %v449_v9  ;;  %441 = vmatpush3.bf16.msra.mxu1 %v449_v9 }
  0x22   :  { %411 = vmatmul.mubr.bf16.vlgmr.msra.gmra.mrb[0].mxu0 %v452_v10  ;;  %419 = vmatmul.mubr.bf16.vlgmr.msra.gmra.mrb[0].mxu1 %v453_v11 }
  0x23   :  { %414 = vmatprep.mubr.bf16.mxu0 %v454_v12  ;;  %422 = vmatprep.mubr.bf16.mxu1 %v455_v13 }
  0x2a   :  { %415 = vmatmul.mubr.bf16.gmra.mrb[4].mxu0 %v456_v14  ;;  %423 = vmatmul.mubr.bf16.gmra.mrb[4].mxu1 %v457_v15 }
  0xf5   :  { %v412_v17 = vpop.f32.mrb[0].mxu0  ;;  %v420_v18 = vpop.f32.mrb[0].mxu1 }
  0xf6   :  { %v290_v19 = vadd.f32 %v412_v17, %v361_v16  ;;  %v298_v20 = vadd.f32 %v420_v18, %v361_v16  ;;  %v225_v21 = vpop.f32.mrb[1].mxu0  ;;  %v257_v22 = vpop.f32.mrb[1].mxu1 }
  0xf7   :  { %v288_v23 = vadd.f32 %v361_v16, %v225_v21  ;;  %v296_v24 = vadd.f32 %v361_v16, %v257_v22  ;;  %v413_v25 = vpop.f32.mrb[2].mxu0  ;;  %v421_v26 = vpop.f32.mrb[2].mxu1 }
  0xf8   :  { %341 = vst [vmem:[%s580_s3 + $0x10] sm:$0xff] %v290_v19  ;;  %349 = vst [vmem:[%s580_s3 + $0x50] sm:$0xff] %v298_v20  ;;  %v291_v27 = vadd.f32 %v413_v25, %v361_v16  ;;  %v299_v28 = vadd.f32 %v421_v26, %v361_v16  ;;  %v228_v29 = vpop.f32.mrb[3].mxu0  ;;  %v260_v30 = vpop.f32.mrb[3].mxu1 }
  0xf9   :  { %339 = vst [vmem:[%s580_s3] sm:$0xff] %v288_v23  ;;  %347 = vst [vmem:[%s580_s3 + $0x40] sm:$0xff] %v296_v24  ;;  %v289_v31 = vadd.f32 %v361_v16, %v228_v29  ;;  %v297_v32 = vadd.f32 %v361_v16, %v260_v30 }
  0xfa   :  { %342 = vst [vmem:[%s580_s3 + $0x18] sm:$0xff] %v291_v27  ;;  %350 = vst [vmem:[%s580_s3 + $0x58] sm:$0xff] %v299_v28 }
  0xfb   :  { %340 = vst [vmem:[%s580_s3 + $0x8] sm:$0xff] %v289_v31  ;;  %348 = vst [vmem:[%s580_s3 + $0x48] sm:$0xff] %v297_v32 }
  0xfd   :  { %v416_v33 = vpop.f32.mrb[4].mxu0  ;;  %v424_v34 = vpop.f32.mrb[4].mxu1 }
  0xfe   :  { %v294_v35 = vadd.f32 %v416_v33, %v361_v16  ;;  %v302_v36 = vadd.f32 %v424_v34, %v361_v16  ;;  %v241_v37 = vpop.f32.mrb[5].mxu0  ;;  %v273_v38 = vpop.f32.mrb[5].mxu1 }
  0xff   :  { %v292_v39 = vadd.f32 %v361_v16, %v241_v37  ;;  %v300_v40 = vadd.f32 %v361_v16, %v273_v38  ;;  %v417_v41 = vpop.f32.mrb[6].mxu0  ;;  %v425_v42 = vpop.f32.mrb[6].mxu1 }
 0x100   :  { %345 = vst [vmem:[%s580_s3 + $0x30] sm:$0xff] %v294_v35  ;;  %353 = vst [vmem:[%s580_s3 + $0x70] sm:$0xff] %v302_v36  ;;  %v295_v43 = vadd.f32 %v417_v41, %v361_v16  ;;  %v303_v44 = vadd.f32 %v425_v42, %v361_v16  ;;  %v244_v45 = vpop.f32.mrb[7].mxu0  ;;  %v276_v46 = vpop.f32.mrb[7].mxu1 }
 0x101   :  { %343 = vst [vmem:[%s580_s3 + $0x20] sm:$0xff] %v292_v39  ;;  %351 = vst [vmem:[%s580_s3 + $0x60] sm:$0xff] %v300_v40  ;;  %v293_v47 = vadd.f32 %v361_v16, %v244_v45  ;;  %v301_v48 = vadd.f32 %v361_v16, %v276_v46 }
 0x102   :  { %346 = vst [vmem:[%s580_s3 + $0x38] sm:$0xff] %v295_v43  ;;  %354 = vst [vmem:[%s580_s3 + $0x78] sm:$0xff] %v303_v44 }
 0x103   :  { %344 = vst [vmem:[%s580_s3 + $0x28] sm:$0xff] %v293_v47  ;;  %352 = vst [vmem:[%s580_s3 + $0x68] sm:$0xff] %v301_v48 }

</bundles_post_ra>
